<compile_context>
chip_gen: v7x
topology: tpu7x:2x2x1
jax: 0.10.0
libtpu: 0.0.40
codegen_flags: <defaults>
</compile_context>

<pallas_src>
import jax
import jax.numpy as jnp
import numpy as np
from jax.experimental import pallas as pl
from jax.experimental.pallas import tpu as pltpu

# ---- scaled-down hyperparameters -------------------------------------------------
# The PyTorch module hardcodes npoint=10000, nsample=256/128/64; the algorithm here is
# identical, only sizes are reduced so the synthetic test runs at small shapes.
NPOINT = 16
RADII = (0.1, 0.2, 0.4)
NSAMPLES = (16, 8, 8)
MLPS = ([16, 16, 32], [32, 64], [64, 32])
IN_CHANNEL = 6        # use_normal=True -> 3 (xyz offsets) + 3 (normals)
BN_EPS = 1e-5
TM_MAX = 512          # point-tile (lane) width; sized for production M=B*10000 while
                      # staying well under v7x's 64 MiB VMEM with bf16 (K, C_in, TM) blocks.


def _round_up(x, m):
    return ((x + m - 1) // m) * m


# ----------------- Pallas kernel: shared 1x1-conv MLP + BN + ReLU + max-pool -------
def _sa_mlp_max_kernel(x_ref, *rest):
    """x_ref: (K, C_in, TM) bf16.  rest = (wt_0, shift_0, ..., wt_{L-1}, shift_{L-1}, out_ref)."""
    out_ref = rest[-1]
    prm = rest[:-1]
    num_layers = len(prm) // 2
    K = x_ref.shape[0]

    def mlp(slab):                                        # slab: (C_in, TM) bf16
        h = slab
        for l in range(num_layers):
            wt, sh = prm[2 * l], prm[2 * l + 1]
            # 1x1 conv == matmul; BN scale is pre-folded into wt, so only +shift remains.
            h = jnp.dot(wt[...], h, preferred_element_type=jnp.float32)   # (C_out, TM) f32
            h = jnp.maximum(h + sh[...], 0.0)                             # BN shift + ReLU (f32)
            if l + 1 < num_layers:
                h = h.astype(jnp.bfloat16)                                # bf16 MXU path
        return h                                          # (c_last, TM) f32

    # torch.max(new_points, 2)[0]: max over the nsample axis, fully inside the kernel
    # (no per-sample grid steps, no output read-modify-write across grid iterations).
    # TODO(synk): at production nsample=256 switch this Python unroll to lax.fori_loop.
    acc = mlp(x_ref[0])
    for k in range(1, K):
        acc = jnp.maximum(acc, mlp(x_ref[k]))
    out_ref[...] = acc.astype(out_ref.dtype)


def sa_mlp_max(new_points, params):
    """new_points: (B, S, K, C_in) float32.
    params: list of (wt: (C_out, C_in) bf16 with BN scale folded in, shift: (C_out, 1) f32).
    Returns (B, S, C_last) float32: conv1x1+BN+ReLU stack, max-pooled over the K axis."""
    B, S, K, C_in = new_points.shape
    M = B * S
    TM = min(TM_MAX, _round_up(M, 128))
    M_pad = _round_up(M, TM)                              # pad instead of asserting divisibility
    c_last = params[-1][0].shape[0]

    # Lane-dense channel-major layout: (K, C_in, M_pad) with points on the lane axis.
    # Padded points produce junk columns that are computed and sliced off; they cannot
    # contaminate real outputs since the max runs only over K within each point.
    # TODO(synk): at production scale, emit this layout directly from the grouping gather
    # instead of a separate transpose pass over the full grouped tensor.
    x = jnp.transpose(new_points.astype(jnp.bfloat16).reshape(M, K, C_in), (1, 2, 0))
    x = jnp.pad(x, ((0, 0), (0, 0), (0, M_pad - M)))

    in_specs = [pl.BlockSpec((K, C_in, TM), lambda i: (0, 0, i))]
    inputs = [x]
    for (wt, sh) in params:
        in_specs.append(pl.BlockSpec(wt.shape, lambda i: (0, 0)))
        in_specs.append(pl.BlockSpec(sh.shape, lambda i: (0, 0)))
        inputs.extend([wt, sh])

    out = pl.pallas_call(
        _sa_mlp_max_kernel,
        out_shape=jax.ShapeDtypeStruct((c_last, M_pad), jnp.float32),
        grid=(M_pad // TM,),
        in_specs=in_specs,
        out_specs=pl.BlockSpec((c_last, TM), lambda i: (0, i)),
        compiler_params=pltpu.CompilerParams(
            dimension_semantics=("parallel",),            # megacore-shards the point axis on v7x
            vmem_limit_bytes=32 * 1024 * 1024),
    )(*inputs)
    out = out[:, :M]                                      # drop padded points
    return jnp.transpose(out.reshape(c_last, B, S), (1, 2, 0))


# ----------------- JAX glue (data-dependent sampling / grouping) -------------------
# TODO(synk): farthest-point sampling (sequential argmax), ball-query sort and the
# gathers are data-dependent and stay in plain JAX rather than in the Pallas kernel.
def index_points(points, idx):
    """points: (B, N, C); idx: (B, ...) int -> (B, ..., C)."""
    B = points.shape[0]
    batch = jnp.arange(B).reshape((B,) + (1,) * (idx.ndim - 1))
    return points[batch, idx]


def square_distance(src, dst):
    """src: (B, N, C), dst: (B, M, C) -> (B, N, M) squared distances."""
    d = -2.0 * jnp.matmul(src, jnp.transpose(dst, (0, 2, 1)))
    d = d + jnp.sum(src ** 2, -1, keepdims=True)
    d = d + jnp.sum(dst ** 2, -1)[:, None, :]
    return d


def farthest_point_sample(xyz, npoint):
    """xyz: (B, N, 3) -> (B, npoint) int32. Deterministic seed point (index 0)."""
    B, N, _ = xyz.shape

    def body(i, state):
        centroids, distance, farthest = state
        centroids = centroids.at[:, i].set(farthest)
        centroid = index_points(xyz, farthest[:, None])            # (B, 1, 3)
        dist = jnp.sum((xyz - centroid) ** 2, -1)                  # (B, N)
        distance = jnp.minimum(distance, dist)
        farthest = jnp.argmax(distance, axis=-1).astype(jnp.int32)
        return centroids, distance, farthest

    centroids = jnp.zeros((B, npoint), jnp.int32)
    distance = jnp.full((B, N), 1e10, jnp.float32)
    farthest = jnp.zeros((B,), jnp.int32)   # torch uses randint; deterministic here
    centroids, _, _ = jax.lax.fori_loop(0, npoint, body, (centroids, distance, farthest))
    return centroids


def query_ball_point(radius, nsample, xyz, new_xyz):
    """xyz: (B, N, 3), new_xyz: (B, S, 3) -> (B, S, nsample) int32 indices into xyz."""
    B, N, _ = xyz.shape
    S = new_xyz.shape[1]
    sqrdists = square_distance(new_xyz, xyz)                       # (B, S, N)
    group_idx = jnp.broadcast_to(jnp.arange(N, dtype=jnp.int32), (B, S, N))
    group_idx = jnp.where(sqrdists > radius ** 2, jnp.int32(N), group_idx)
    group_idx = jnp.sort(group_idx, axis=-1)[:, :, :nsample]
    group_first = jnp.broadcast_to(group_idx[:, :, :1], (B, S, nsample))
    group_idx = jnp.where(group_idx == N, group_first, group_idx)
    return group_idx


def sample_and_group(npoint, radius, nsample, xyz, points):
    """xyz: (B, N, 3), points: (B, Np, D) or None."""
    B, N, C = xyz.shape
    fps_idx = farthest_point_sample(xyz, npoint)                   # (B, S)
    new_xyz = index_points(xyz, fps_idx)                           # (B, S, 3)
    idx = query_ball_point(radius, nsample, xyz, new_xyz)          # (B, S, K)
    grouped_xyz = index_points(xyz, idx)                           # (B, S, K, 3)
    grouped_xyz_norm = grouped_xyz - new_xyz[:, :, None, :]
    if points is not None:
        grouped_points = index_points(points, idx)                 # (B, S, K, D)
        new_points = jnp.concatenate([grouped_xyz_norm, grouped_points], axis=-1)
    else:
        new_points = grouped_xyz_norm
    return new_xyz, new_points


def set_abstraction(xyz, points, params, npoint, radius, nsample):
    """xyz: (B, 3, N) channel-first; points: (B, D, Np) or None. Matches PointNetSetAbstraction."""
    xyz_t = jnp.transpose(xyz, (0, 2, 1))
    points_t = None if points is None else jnp.transpose(points, (0, 2, 1))
    new_xyz, new_points = sample_and_group(npoint, radius, nsample, xyz_t, points_t)
    feat = sa_mlp_max(new_points, params)                          # (B, S, C_last)
    return jnp.transpose(new_xyz, (0, 2, 1)), jnp.transpose(feat, (0, 2, 1))


def feat_extraction_layer_forward(pts, sa_params, use_normal=True):
    """pts: (B, 6, N) (xyz + normal, channel-first). Returns (xyz:(B,S,3), feat:(B,S,32)).
    Note: exactly like the PyTorch reference, sa2/sa3 are fed the raw `normal` array as
    their point features (the learned features from sa1/sa2 are intentionally discarded),
    hence in_channel=6 for all three MLP stacks."""
    if use_normal:
        xyz = pts[:, :3, :]
        normal = pts[:, 3:, :]
    else:
        xyz, normal = pts, None
    p1, p2, p3 = sa_params
    out_xyz, _ = set_abstraction(xyz, normal, p1, NPOINT, RADII[0], NSAMPLES[0])
    out_xyz, _ = set_abstraction(out_xyz, normal, p2, NPOINT, RADII[1], NSAMPLES[1])
    out_xyz, out_pts = set_abstraction(out_xyz, normal, p3, NPOINT, RADII[2], NSAMPLES[2])
    return jnp.transpose(out_xyz, (0, 2, 1)), jnp.transpose(out_pts, (0, 2, 1))


# ----------------- deterministic parameter init ------------------------------------
# TODO(synk): BatchNorm2d is implemented in eval mode (running stats folded into the
# conv weight / a per-channel shift); training-mode batch statistics would need a
# cross-tile reduction.
def init_sa_params(key, in_channel, mlp):
    """Each layer folds Conv2d(1x1)+bias+BatchNorm2d(eval) into:
    wt = (W * gamma/sqrt(var+eps)).T  (C_out, C_in) bf16,  shift = (b-mean)*scale+beta (C_out,1) f32."""
    params = []
    last = in_channel
    for out_c in mlp:
        key, kw, kb = jax.random.split(key, 3)
        w = jax.random.normal(kw, (last, out_c), jnp.float32) / np.sqrt(last)
        b = jax.random.normal(kb, (out_c,), jnp.float32) * 0.01
        gamma = jnp.ones((out_c,), jnp.float32)
        beta = jnp.zeros((out_c,), jnp.float32)
        running_mean = jnp.zeros((out_c,), jnp.float32)
        running_var = jnp.ones((out_c,), jnp.float32)
        scale = gamma / jnp.sqrt(running_var + BN_EPS)
        shift = (b - running_mean) * scale + beta
        wt = jnp.transpose(w * scale[None, :]).astype(jnp.bfloat16)   # (C_out, C_in), BN folded
        params.append((wt, shift.reshape(out_c, 1)))
        last = out_c
    return params, key


if __name__ == "__main__":
    B, N = 2, 64
    key = jax.random.PRNGKey(0)
    key, kin = jax.random.split(key)
    pts = jax.random.normal(kin, (B, IN_CHANNEL, N), jnp.float32)

    sa_params = []
    for mlp in MLPS:
        p, key = init_sa_params(key, IN_CHANNEL, mlp)
        sa_params.append(p)

    fwd = jax.jit(lambda x: feat_extraction_layer_forward(x, sa_params, use_normal=True))
    out_xyz, out_pts = fwd(pts)
    jax.block_until_ready((out_xyz, out_pts))
    assert out_xyz.shape == (B, NPOINT, 3), out_xyz.shape
    assert out_pts.shape == (B, NPOINT, MLPS[-1][-1]), out_pts.shape
    print("KERNEL_OK")
</pallas_src>

<mosaic_0001>
module attributes {stable_mosaic.version = 11 : i64} {
  func.func @_sa_mlp_max_kernel(%arg0: i32, %arg1: memref<8x6x128xbf16, #tpu.memory_space<vmem>>, %arg2: memref<64x6xbf16, #tpu.memory_space<vmem>>, %arg3: memref<64x1xf32, #tpu.memory_space<vmem>>, %arg4: memref<32x64xbf16, #tpu.memory_space<vmem>>, %arg5: memref<32x1xf32, #tpu.memory_space<vmem>>, %arg6: memref<32x128xf32, #tpu.memory_space<vmem>>) attributes {dimension_semantics = [#tpu.dimension_semantics<parallel>], iteration_bounds = array<i64: 1>, scalar_prefetch = 0 : i64, scratch_operands = 0 : i64, tpu.core_type = #tpu.core_type<tc>, window_params = [{transform_indices = @transform_0, window_bounds = array<i64: 8, 6, 128>}, {pipeline_mode = #tpu.pipeline_mode<synchronous>, transform_indices = @transform_1, window_bounds = array<i64: 64, 6>}, {pipeline_mode = #tpu.pipeline_mode<synchronous>, transform_indices = @transform_2, window_bounds = array<i64: 64, 1>}, {pipeline_mode = #tpu.pipeline_mode<synchronous>, transform_indices = @transform_3, window_bounds = array<i64: 32, 64>}, {pipeline_mode = #tpu.pipeline_mode<synchronous>, transform_indices = @transform_4, window_bounds = array<i64: 32, 1>}, {transform_indices = @transform_5, window_bounds = array<i64: 32, 128>}]} {
    %c0 = arith.constant 0 : index
    %c0_0 = arith.constant 0 : index
    %c0_1 = arith.constant 0 : index
    %0 = vector.load %arg1[%c0, %c0_0, %c0_1] : memref<8x6x128xbf16, #tpu.memory_space<vmem>>, vector<1x6x128xbf16>
    %1 = vector.shape_cast %0 : vector<1x6x128xbf16> to vector<6x128xbf16>
    %c0_2 = arith.constant 0 : index
    %c0_3 = arith.constant 0 : index
    %2 = vector.load %arg2[%c0_2, %c0_3] : memref<64x6xbf16, #tpu.memory_space<vmem>>, vector<64x6xbf16>
    %cst = arith.constant dense<0.000000e+00> : vector<64x128xf32>
    %3 = tpu.matmul %2, %1, %cst {dimension_numbers = #tpu.dot_dimension_numbers<[1], [0], [0], [1], [0, 0, 1, 1], [], []>} : vector<64x6xbf16>, vector<6x128xbf16>, vector<64x128xf32> -> vector<64x128xf32>
    %c0_4 = arith.constant 0 : index
    %c0_5 = arith.constant 0 : index
    %4 = vector.load %arg3[%c0_4, %c0_5] : memref<64x1xf32, #tpu.memory_space<vmem>>, vector<64x1xf32>
    %5 = vector.broadcast %4 : vector<64x1xf32> to vector<64x128xf32>
    %6 = arith.addf %3, %5 : vector<64x128xf32>
    %cst_6 = arith.constant 0.000000e+00 : f32
    %7 = vector.broadcast %cst_6 : f32 to vector<64x128xf32>
    %8 = arith.maximumf %6, %7 : vector<64x128xf32>
    %9 = arith.truncf %8 : vector<64x128xf32> to vector<64x128xbf16>
    %c0_7 = arith.constant 0 : index
    %c0_8 = arith.constant 0 : index
    %10 = vector.load %arg4[%c0_7, %c0_8] : memref<32x64xbf16, #tpu.memory_space<vmem>>, vector<32x64xbf16>
    %cst_9 = arith.constant dense<0.000000e+00> : vector<32x128xf32>
    %11 = tpu.matmul %10, %9, %cst_9 {dimension_numbers = #tpu.dot_dimension_numbers<[1], [0], [0], [1], [0, 0, 1, 1], [], []>} : vector<32x64xbf16>, vector<64x128xbf16>, vector<32x128xf32> -> vector<32x128xf32>
    %c0_10 = arith.constant 0 : index
    %c0_11 = arith.constant 0 : index
    %12 = vector.load %arg5[%c0_10, %c0_11] : memref<32x1xf32, #tpu.memory_space<vmem>>, vector<32x1xf32>
    %13 = vector.broadcast %12 : vector<32x1xf32> to vector<32x128xf32>
    %14 = arith.addf %11, %13 : vector<32x128xf32>
    %cst_12 = arith.constant 0.000000e+00 : f32
    %15 = vector.broadcast %cst_12 : f32 to vector<32x128xf32>
    %16 = arith.maximumf %14, %15 : vector<32x128xf32>
    %c1 = arith.constant 1 : index
    %c0_13 = arith.constant 0 : index
    %c0_14 = arith.constant 0 : index
    %17 = vector.load %arg1[%c1, %c0_13, %c0_14] : memref<8x6x128xbf16, #tpu.memory_space<vmem>>, vector<1x6x128xbf16>
    %18 = vector.shape_cast %17 : vector<1x6x128xbf16> to vector<6x128xbf16>
    %c0_15 = arith.constant 0 : index
    %c0_16 = arith.constant 0 : index
    %19 = vector.load %arg2[%c0_15, %c0_16] : memref<64x6xbf16, #tpu.memory_space<vmem>>, vector<64x6xbf16>
    %cst_17 = arith.constant dense<0.000000e+00> : vector<64x128xf32>
    %20 = tpu.matmul %19, %18, %cst_17 {dimension_numbers = #tpu.dot_dimension_numbers<[1], [0], [0], [1], [0, 0, 1, 1], [], []>} : vector<64x6xbf16>, vector<6x128xbf16>, vector<64x128xf32> -> vector<64x128xf32>
    %c0_18 = arith.constant 0 : index
    %c0_19 = arith.constant 0 : index
    %21 = vector.load %arg3[%c0_18, %c0_19] : memref<64x1xf32, #tpu.memory_space<vmem>>, vector<64x1xf32>
    %22 = vector.broadcast %21 : vector<64x1xf32> to vector<64x128xf32>
    %23 = arith.addf %20, %22 : vector<64x128xf32>
    %cst_20 = arith.constant 0.000000e+00 : f32
    %24 = vector.broadcast %cst_20 : f32 to vector<64x128xf32>
    %25 = arith.maximumf %23, %24 : vector<64x128xf32>
    %26 = arith.truncf %25 : vector<64x128xf32> to vector<64x128xbf16>
    %c0_21 = arith.constant 0 : index
    %c0_22 = arith.constant 0 : index
    %27 = vector.load %arg4[%c0_21, %c0_22] : memref<32x64xbf16, #tpu.memory_space<vmem>>, vector<32x64xbf16>
    %cst_23 = arith.constant dense<0.000000e+00> : vector<32x128xf32>
    %28 = tpu.matmul %27, %26, %cst_23 {dimension_numbers = #tpu.dot_dimension_numbers<[1], [0], [0], [1], [0, 0, 1, 1], [], []>} : vector<32x64xbf16>, vector<64x128xbf16>, vector<32x128xf32> -> vector<32x128xf32>
    %c0_24 = arith.constant 0 : index
    %c0_25 = arith.constant 0 : index
    %29 = vector.load %arg5[%c0_24, %c0_25] : memref<32x1xf32, #tpu.memory_space<vmem>>, vector<32x1xf32>
    %30 = vector.broadcast %29 : vector<32x1xf32> to vector<32x128xf32>
    %31 = arith.addf %28, %30 : vector<32x128xf32>
    %cst_26 = arith.constant 0.000000e+00 : f32
    %32 = vector.broadcast %cst_26 : f32 to vector<32x128xf32>
    %33 = arith.maximumf %31, %32 : vector<32x128xf32>
    %34 = arith.maximumf %16, %33 : vector<32x128xf32>
    %c2 = arith.constant 2 : index
    %c0_27 = arith.constant 0 : index
    %c0_28 = arith.constant 0 : index
    %35 = vector.load %arg1[%c2, %c0_27, %c0_28] : memref<8x6x128xbf16, #tpu.memory_space<vmem>>, vector<1x6x128xbf16>
    %36 = vector.shape_cast %35 : vector<1x6x128xbf16> to vector<6x128xbf16>
    %c0_29 = arith.constant 0 : index
    %c0_30 = arith.constant 0 : index
    %37 = vector.load %arg2[%c0_29, %c0_30] : memref<64x6xbf16, #tpu.memory_space<vmem>>, vector<64x6xbf16>
    %cst_31 = arith.constant dense<0.000000e+00> : vector<64x128xf32>
    %38 = tpu.matmul %37, %36, %cst_31 {dimension_numbers = #tpu.dot_dimension_numbers<[1], [0], [0], [1], [0, 0, 1, 1], [], []>} : vector<64x6xbf16>, vector<6x128xbf16>, vector<64x128xf32> -> vector<64x128xf32>
    %c0_32 = arith.constant 0 : index
    %c0_33 = arith.constant 0 : index
    %39 = vector.load %arg3[%c0_32, %c0_33] : memref<64x1xf32, #tpu.memory_space<vmem>>, vector<64x1xf32>
    %40 = vector.broadcast %39 : vector<64x1xf32> to vector<64x128xf32>
    %41 = arith.addf %38, %40 : vector<64x128xf32>
    %cst_34 = arith.constant 0.000000e+00 : f32
    %42 = vector.broadcast %cst_34 : f32 to vector<64x128xf32>
    %43 = arith.maximumf %41, %42 : vector<64x128xf32>
    %44 = arith.truncf %43 : vector<64x128xf32> to vector<64x128xbf16>
    %c0_35 = arith.constant 0 : index
    %c0_36 = arith.constant 0 : index
    %45 = vector.load %arg4[%c0_35, %c0_36] : memref<32x64xbf16, #tpu.memory_space<vmem>>, vector<32x64xbf16>
    %cst_37 = arith.constant dense<0.000000e+00> : vector<32x128xf32>
    %46 = tpu.matmul %45, %44, %cst_37 {dimension_numbers = #tpu.dot_dimension_numbers<[1], [0], [0], [1], [0, 0, 1, 1], [], []>} : vector<32x64xbf16>, vector<64x128xbf16>, vector<32x128xf32> -> vector<32x128xf32>
    %c0_38 = arith.constant 0 : index
    %c0_39 = arith.constant 0 : index
    %47 = vector.load %arg5[%c0_38, %c0_39] : memref<32x1xf32, #tpu.memory_space<vmem>>, vector<32x1xf32>
    %48 = vector.broadcast %47 : vector<32x1xf32> to vector<32x128xf32>
    %49 = arith.addf %46, %48 : vector<32x128xf32>
    %cst_40 = arith.constant 0.000000e+00 : f32
    %50 = vector.broadcast %cst_40 : f32 to vector<32x128xf32>
    %51 = arith.maximumf %49, %50 : vector<32x128xf32>
    %52 = arith.maximumf %34, %51 : vector<32x128xf32>
    %c3 = arith.constant 3 : index
    %c0_41 = arith.constant 0 : index
    %c0_42 = arith.constant 0 : index
    %53 = vector.load %arg1[%c3, %c0_41, %c0_42] : memref<8x6x128xbf16, #tpu.memory_space<vmem>>, vector<1x6x128xbf16>
    %54 = vector.shape_cast %53 : vector<1x6x128xbf16> to vector<6x128xbf16>
    %c0_43 = arith.constant 0 : index
    %c0_44 = arith.constant 0 : index
    %55 = vector.load %arg2[%c0_43, %c0_44] : memref<64x6xbf16, #tpu.memory_space<vmem>>, vector<64x6xbf16>
    %cst_45 = arith.constant dense<0.000000e+00> : vector<64x128xf32>
    %56 = tpu.matmul %55, %54, %cst_45 {dimension_numbers = #tpu.dot_dimension_numbers<[1], [0], [0], [1], [0, 0, 1, 1], [], []>} : vector<64x6xbf16>, vector<6x128xbf16>, vector<64x128xf32> -> vector<64x128xf32>
    %c0_46 = arith.constant 0 : index
    %c0_47 = arith.constant 0 : index
    %57 = vector.load %arg3[%c0_46, %c0_47] : memref<64x1xf32, #tpu.memory_space<vmem>>, vector<64x1xf32>
    %58 = vector.broadcast %57 : vector<64x1xf32> to vector<64x128xf32>
    %59 = arith.addf %56, %58 : vector<64x128xf32>
    %cst_48 = arith.constant 0.000000e+00 : f32
    %60 = vector.broadcast %cst_48 : f32 to vector<64x128xf32>
    %61 = arith.maximumf %59, %60 : vector<64x128xf32>
    %62 = arith.truncf %61 : vector<64x128xf32> to vector<64x128xbf16>
    %c0_49 = arith.constant 0 : index
    %c0_50 = arith.constant 0 : index
    %63 = vector.load %arg4[%c0_49, %c0_50] : memref<32x64xbf16, #tpu.memory_space<vmem>>, vector<32x64xbf16>
    %cst_51 = arith.constant dense<0.000000e+00> : vector<32x128xf32>
    %64 = tpu.matmul %63, %62, %cst_51 {dimension_numbers = #tpu.dot_dimension_numbers<[1], [0], [0], [1], [0, 0, 1, 1], [], []>} : vector<32x64xbf16>, vector<64x128xbf16>, vector<32x128xf32> -> vector<32x128xf32>
    %c0_52 = arith.constant 0 : index
    %c0_53 = arith.constant 0 : index
    %65 = vector.load %arg5[%c0_52, %c0_53] : memref<32x1xf32, #tpu.memory_space<vmem>>, vector<32x1xf32>
    %66 = vector.broadcast %65 : vector<32x1xf32> to vector<32x128xf32>
    %67 = arith.addf %64, %66 : vector<32x128xf32>
    %cst_54 = arith.constant 0.000000e+00 : f32
    %68 = vector.broadcast %cst_54 : f32 to vector<32x128xf32>
    %69 = arith.maximumf %67, %68 : vector<32x128xf32>
    %70 = arith.maximumf %52, %69 : vector<32x128xf32>
    %c4 = arith.constant 4 : index
    %c0_55 = arith.constant 0 : index
    %c0_56 = arith.constant 0 : index
    %71 = vector.load %arg1[%c4, %c0_55, %c0_56] : memref<8x6x128xbf16, #tpu.memory_space<vmem>>, vector<1x6x128xbf16>
    %72 = vector.shape_cast %71 : vector<1x6x128xbf16> to vector<6x128xbf16>
    %c0_57 = arith.constant 0 : index
    %c0_58 = arith.constant 0 : index
    %73 = vector.load %arg2[%c0_57, %c0_58] : memref<64x6xbf16, #tpu.memory_space<vmem>>, vector<64x6xbf16>
    %cst_59 = arith.constant dense<0.000000e+00> : vector<64x128xf32>
    %74 = tpu.matmul %73, %72, %cst_59 {dimension_numbers = #tpu.dot_dimension_numbers<[1], [0], [0], [1], [0, 0, 1, 1], [], []>} : vector<64x6xbf16>, vector<6x128xbf16>, vector<64x128xf32> -> vector<64x128xf32>
    %c0_60 = arith.constant 0 : index
    %c0_61 = arith.constant 0 : index
    %75 = vector.load %arg3[%c0_60, %c0_61] : memref<64x1xf32, #tpu.memory_space<vmem>>, vector<64x1xf32>
    %76 = vector.broadcast %75 : vector<64x1xf32> to vector<64x128xf32>
    %77 = arith.addf %74, %76 : vector<64x128xf32>
    %cst_62 = arith.constant 0.000000e+00 : f32
    %78 = vector.broadcast %cst_62 : f32 to vector<64x128xf32>
    %79 = arith.maximumf %77, %78 : vector<64x128xf32>
    %80 = arith.truncf %79 : vector<64x128xf32> to vector<64x128xbf16>
    %c0_63 = arith.constant 0 : index
    %c0_64 = arith.constant 0 : index
    %81 = vector.load %arg4[%c0_63, %c0_64] : memref<32x64xbf16, #tpu.memory_space<vmem>>, vector<32x64xbf16>
    %cst_65 = arith.constant dense<0.000000e+00> : vector<32x128xf32>
    %82 = tpu.matmul %81, %80, %cst_65 {dimension_numbers = #tpu.dot_dimension_numbers<[1], [0], [0], [1], [0, 0, 1, 1], [], []>} : vector<32x64xbf16>, vector<64x128xbf16>, vector<32x128xf32> -> vector<32x128xf32>
    %c0_66 = arith.constant 0 : index
    %c0_67 = arith.constant 0 : index
    %83 = vector.load %arg5[%c0_66, %c0_67] : memref<32x1xf32, #tpu.memory_space<vmem>>, vector<32x1xf32>
    %84 = vector.broadcast %83 : vector<32x1xf32> to vector<32x128xf32>
    %85 = arith.addf %82, %84 : vector<32x128xf32>
    %cst_68 = arith.constant 0.000000e+00 : f32
    %86 = vector.broadcast %cst_68 : f32 to vector<32x128xf32>
    %87 = arith.maximumf %85, %86 : vector<32x128xf32>
    %88 = arith.maximumf %70, %87 : vector<32x128xf32>
    %c5 = arith.constant 5 : index
    %c0_69 = arith.constant 0 : index
    %c0_70 = arith.constant 0 : index
    %89 = vector.load %arg1[%c5, %c0_69, %c0_70] : memref<8x6x128xbf16, #tpu.memory_space<vmem>>, vector<1x6x128xbf16>
    %90 = vector.shape_cast %89 : vector<1x6x128xbf16> to vector<6x128xbf16>
    %c0_71 = arith.constant 0 : index
    %c0_72 = arith.constant 0 : index
    %91 = vector.load %arg2[%c0_71, %c0_72] : memref<64x6xbf16, #tpu.memory_space<vmem>>, vector<64x6xbf16>
    %cst_73 = arith.constant dense<0.000000e+00> : vector<64x128xf32>
    %92 = tpu.matmul %91, %90, %cst_73 {dimension_numbers = #tpu.dot_dimension_numbers<[1], [0], [0], [1], [0, 0, 1, 1], [], []>} : vector<64x6xbf16>, vector<6x128xbf16>, vector<64x128xf32> -> vector<64x128xf32>
    %c0_74 = arith.constant 0 : index
    %c0_75 = arith.constant 0 : index
    %93 = vector.load %arg3[%c0_74, %c0_75] : memref<64x1xf32, #tpu.memory_space<vmem>>, vector<64x1xf32>
    %94 = vector.broadcast %93 : vector<64x1xf32> to vector<64x128xf32>
    %95 = arith.addf %92, %94 : vector<64x128xf32>
    %cst_76 = arith.constant 0.000000e+00 : f32
    %96 = vector.broadcast %cst_76 : f32 to vector<64x128xf32>
    %97 = arith.maximumf %95, %96 : vector<64x128xf32>
    %98 = arith.truncf %97 : vector<64x128xf32> to vector<64x128xbf16>
    %c0_77 = arith.constant 0 : index
    %c0_78 = arith.constant 0 : index
    %99 = vector.load %arg4[%c0_77, %c0_78] : memref<32x64xbf16, #tpu.memory_space<vmem>>, vector<32x64xbf16>
    %cst_79 = arith.constant dense<0.000000e+00> : vector<32x128xf32>
    %100 = tpu.matmul %99, %98, %cst_79 {dimension_numbers = #tpu.dot_dimension_numbers<[1], [0], [0], [1], [0, 0, 1, 1], [], []>} : vector<32x64xbf16>, vector<64x128xbf16>, vector<32x128xf32> -> vector<32x128xf32>
    %c0_80 = arith.constant 0 : index
    %c0_81 = arith.constant 0 : index
    %101 = vector.load %arg5[%c0_80, %c0_81] : memref<32x1xf32, #tpu.memory_space<vmem>>, vector<32x1xf32>
    %102 = vector.broadcast %101 : vector<32x1xf32> to vector<32x128xf32>
    %103 = arith.addf %100, %102 : vector<32x128xf32>
    %cst_82 = arith.constant 0.000000e+00 : f32
    %104 = vector.broadcast %cst_82 : f32 to vector<32x128xf32>
    %105 = arith.maximumf %103, %104 : vector<32x128xf32>
    %106 = arith.maximumf %88, %105 : vector<32x128xf32>
    %c6 = arith.constant 6 : index
    %c0_83 = arith.constant 0 : index
    %c0_84 = arith.constant 0 : index
    %107 = vector.load %arg1[%c6, %c0_83, %c0_84] : memref<8x6x128xbf16, #tpu.memory_space<vmem>>, vector<1x6x128xbf16>
    %108 = vector.shape_cast %107 : vector<1x6x128xbf16> to vector<6x128xbf16>
    %c0_85 = arith.constant 0 : index
    %c0_86 = arith.constant 0 : index
    %109 = vector.load %arg2[%c0_85, %c0_86] : memref<64x6xbf16, #tpu.memory_space<vmem>>, vector<64x6xbf16>
    %cst_87 = arith.constant dense<0.000000e+00> : vector<64x128xf32>
    %110 = tpu.matmul %109, %108, %cst_87 {dimension_numbers = #tpu.dot_dimension_numbers<[1], [0], [0], [1], [0, 0, 1, 1], [], []>} : vector<64x6xbf16>, vector<6x128xbf16>, vector<64x128xf32> -> vector<64x128xf32>
    %c0_88 = arith.constant 0 : index
    %c0_89 = arith.constant 0 : index
    %111 = vector.load %arg3[%c0_88, %c0_89] : memref<64x1xf32, #tpu.memory_space<vmem>>, vector<64x1xf32>
    %112 = vector.broadcast %111 : vector<64x1xf32> to vector<64x128xf32>
    %113 = arith.addf %110, %112 : vector<64x128xf32>
    %cst_90 = arith.constant 0.000000e+00 : f32
    %114 = vector.broadcast %cst_90 : f32 to vector<64x128xf32>
    %115 = arith.maximumf %113, %114 : vector<64x128xf32>
    %116 = arith.truncf %115 : vector<64x128xf32> to vector<64x128xbf16>
    %c0_91 = arith.constant 0 : index
    %c0_92 = arith.constant 0 : index
    %117 = vector.load %arg4[%c0_91, %c0_92] : memref<32x64xbf16, #tpu.memory_space<vmem>>, vector<32x64xbf16>
    %cst_93 = arith.constant dense<0.000000e+00> : vector<32x128xf32>
    %118 = tpu.matmul %117, %116, %cst_93 {dimension_numbers = #tpu.dot_dimension_numbers<[1], [0], [0], [1], [0, 0, 1, 1], [], []>} : vector<32x64xbf16>, vector<64x128xbf16>, vector<32x128xf32> -> vector<32x128xf32>
    %c0_94 = arith.constant 0 : index
    %c0_95 = arith.constant 0 : index
    %119 = vector.load %arg5[%c0_94, %c0_95] : memref<32x1xf32, #tpu.memory_space<vmem>>, vector<32x1xf32>
    %120 = vector.broadcast %119 : vector<32x1xf32> to vector<32x128xf32>
    %121 = arith.addf %118, %120 : vector<32x128xf32>
    %cst_96 = arith.constant 0.000000e+00 : f32
    %122 = vector.broadcast %cst_96 : f32 to vector<32x128xf32>
    %123 = arith.maximumf %121, %122 : vector<32x128xf32>
    %124 = arith.maximumf %106, %123 : vector<32x128xf32>
    %c7 = arith.constant 7 : index
    %c0_97 = arith.constant 0 : index
    %c0_98 = arith.constant 0 : index
    %125 = vector.load %arg1[%c7, %c0_97, %c0_98] : memref<8x6x128xbf16, #tpu.memory_space<vmem>>, vector<1x6x128xbf16>
    %126 = vector.shape_cast %125 : vector<1x6x128xbf16> to vector<6x128xbf16>
    %c0_99 = arith.constant 0 : index
    %c0_100 = arith.constant 0 : index
    %127 = vector.load %arg2[%c0_99, %c0_100] : memref<64x6xbf16, #tpu.memory_space<vmem>>, vector<64x6xbf16>
    %cst_101 = arith.constant dense<0.000000e+00> : vector<64x128xf32>
    %128 = tpu.matmul %127, %126, %cst_101 {dimension_numbers = #tpu.dot_dimension_numbers<[1], [0], [0], [1], [0, 0, 1, 1], [], []>} : vector<64x6xbf16>, vector<6x128xbf16>, vector<64x128xf32> -> vector<64x128xf32>
    %c0_102 = arith.constant 0 : index
    %c0_103 = arith.constant 0 : index
    %129 = vector.load %arg3[%c0_102, %c0_103] : memref<64x1xf32, #tpu.memory_space<vmem>>, vector<64x1xf32>
    %130 = vector.broadcast %129 : vector<64x1xf32> to vector<64x128xf32>
    %131 = arith.addf %128, %130 : vector<64x128xf32>
    %cst_104 = arith.constant 0.000000e+00 : f32
    %132 = vector.broadcast %cst_104 : f32 to vector<64x128xf32>
    %133 = arith.maximumf %131, %132 : vector<64x128xf32>
    %134 = arith.truncf %133 : vector<64x128xf32> to vector<64x128xbf16>
    %c0_105 = arith.constant 0 : index
    %c0_106 = arith.constant 0 : index
    %135 = vector.load %arg4[%c0_105, %c0_106] : memref<32x64xbf16, #tpu.memory_space<vmem>>, vector<32x64xbf16>
    %cst_107 = arith.constant dense<0.000000e+00> : vector<32x128xf32>
    %136 = tpu.matmul %135, %134, %cst_107 {dimension_numbers = #tpu.dot_dimension_numbers<[1], [0], [0], [1], [0, 0, 1, 1], [], []>} : vector<32x64xbf16>, vector<64x128xbf16>, vector<32x128xf32> -> vector<32x128xf32>
    %c0_108 = arith.constant 0 : index
    %c0_109 = arith.constant 0 : index
    %137 = vector.load %arg5[%c0_108, %c0_109] : memref<32x1xf32, #tpu.memory_space<vmem>>, vector<32x1xf32>
    %138 = vector.broadcast %137 : vector<32x1xf32> to vector<32x128xf32>
    %139 = arith.addf %136, %138 : vector<32x128xf32>
    %cst_110 = arith.constant 0.000000e+00 : f32
    %140 = vector.broadcast %cst_110 : f32 to vector<32x128xf32>
    %141 = arith.maximumf %139, %140 : vector<32x128xf32>
    %142 = arith.maximumf %124, %141 : vector<32x128xf32>
    %c0_111 = arith.constant 0 : index
    %c0_112 = arith.constant 0 : index
    %143 = vector.load %arg6[%c0_111, %c0_112] : memref<32x128xf32, #tpu.memory_space<vmem>>, vector<32x128xf32>
    tpu.vector_store %arg6[%c0_111, %c0_112], %142 {strides = array<i32>} : memref<32x128xf32, #tpu.memory_space<vmem>>, vector<32x128xf32>,
    return
  }
  func.func @transform_0(%arg0: i32) -> (i32, i32, i32) {
    %c0_i32 = arith.constant 0 : i32
    %c0_i32_0 = arith.constant 0 : i32
    %c0_i32_1 = arith.constant 0 : i32
    return %c0_i32, %c0_i32_0, %arg0 : i32, i32, i32
  }
  func.func @transform_1(%arg0: i32) -> (i32, i32) {
    %c0_i32 = arith.constant 0 : i32
    %c0_i32_0 = arith.constant 0 : i32
    %c0_i32_1 = arith.constant 0 : i32
    return %c0_i32, %c0_i32_0 : i32, i32
  }
  func.func @transform_2(%arg0: i32) -> (i32, i32) {
    %c0_i32 = arith.constant 0 : i32
    %c0_i32_0 = arith.constant 0 : i32
    %c0_i32_1 = arith.constant 0 : i32
    return %c0_i32, %c0_i32_0 : i32, i32
  }
  func.func @transform_3(%arg0: i32) -> (i32, i32) {
    %c0_i32 = arith.constant 0 : i32
    %c0_i32_0 = arith.constant 0 : i32
    %c0_i32_1 = arith.constant 0 : i32
    return %c0_i32, %c0_i32_0 : i32, i32
  }
  func.func @transform_4(%arg0: i32) -> (i32, i32) {
    %c0_i32 = arith.constant 0 : i32
    %c0_i32_0 = arith.constant 0 : i32
    %c0_i32_1 = arith.constant 0 : i32
    return %c0_i32, %c0_i32_0 : i32, i32
  }
  func.func @transform_5(%arg0: i32) -> (i32, i32) {
    %c0_i32 = arith.constant 0 : i32
    %c0_i32_0 = arith.constant 0 : i32
    return %c0_i32, %arg0 : i32, i32
  }
}

</mosaic_0001>

<bundles_post_ra>
// kernel: custom-call.16
= control target key start
LH: loop header
LB: loop body
LE: loop exit
PB: predicated region body
PF: predicated region fallthrough
CT: control target
= control target key end

     0   :  { %s6_s0 = inlined_call_operand.vmem [shape: f32[2,64], index: 0, kind: output, shape index: {}]  }

// kernel: custom-call.18
= control target key start
LH: loop header
LB: loop body
LE: loop exit
PB: predicated region body
PF: predicated region fallthrough
CT: control target
= control target key end

     0   :  { %s6_s0 = inlined_call_operand.vmem [shape: f32[2,16], index: 0, kind: output, shape index: {}]  }

// kernel: _lambda_.1
= control target key start
LH: loop header
LB: loop body
LE: loop exit
PB: predicated region body
PF: predicated region fallthrough
CT: control target
= control target key end

     0   :  { %vm111_vm0 = vcmask 1042432   ;;  %vm98_vm1 = vcmask 48128   ;;  %v1613_v1 = vmov 0   ;;  %vm230_vm2 = vcmask 523264   ;;  %s1978_s0 = inlined_call_operand.vmem [shape: bf16[8,6,128], index: 0, kind: input, shape index: {}]   ;;  %s1979_s1 = inlined_call_operand.vmem [shape: bf16[64,6], index: 1, kind: input, shape index: {}]   ;;  %s1980_s2 = inlined_call_operand.vmem [shape: f32[64,1], index: 2, kind: input, shape index: {}]   ;;  %s1981_s4 = inlined_call_operand.vmem [shape: f32[32,1], index: 4, kind: input, shape index: {}]   ;;  %s1982_s3 = inlined_call_operand.vmem [shape: bf16[32,64], index: 3, kind: input, shape index: {}]   ;;  %s1983_s5 = inlined_call_operand.vmem [shape: f32[32,128], index: 5, kind: output, shape index: {}]  }
   0x1   :  { %v21_v0 = vld [vmem:[%s1978_s0] sm:$0x7]  ;;  %1605 = vset.pattern.permute.xlu0 %v1613_v1  ;;  %1606 = vset.pattern.permute.xlu1 %v1613_v1  ;;  %v1657_v4 = vld [vmem:[%s1979_s1 + $0x8] sm:$0xff]   ;;  %v1283_v5 = vld [vmem:[%s1978_s0 + $0x4] sm:$0x7] }
   0x2   :  { %1596 = vmatprep.subr.msk.bf16.mxu0 %vm111_vm0, %v21_v0  ;;  %v113_v2 = vsel %vm111_vm0, %v21_v0, 0  ;;  %v1652_v3 = vld [vmem:[%s1979_s1] sm:$0xff]   ;;  %v293_v6 = vsel %vm111_vm0, %v1283_v5, 0  ;;  %v1669_v7 = vld [vmem:[%s1979_s1 + $0x10] sm:$0xff]   ;;  %v1290_v8 = vld [vmem:[%s1978_s0 + $0x8] sm:$0x7] }
   0x3   :  { %1421 = vmatpush3.bf16.msra.mxu0 %v113_v2  ;;  %1422 = vmatprep.mubr.msk.bf16.mxu0 %vm98_vm1, %v1652_v3  ;;  %v30_v9 = vld [vmem:[%s1980_s2] sm:$0xff]  ;;  %v32_v10 = vld [vmem:[%s1980_s2 + $0x10] sm:$0xff]  ;;  %v31_v11 = vld [vmem:[%s1980_s2 + $0x8] sm:$0xff]  ;;  %v432_v18 = vsel %vm111_vm0, %v1290_v8, 0 }
   0x4   :  { %1597 = vmatprep.subr.msk.bf16.mxu0 %vm111_vm0, %v1283_v5  ;;  %40 = vperm.xlu0 %1605, %v30_v9   ;;  %v1691_v12 = vld [vmem:[%s1979_s1 + $0x18] sm:$0xff]   ;;  %v34_v14 = vld [vmem:[%s1980_s2 + $0x20] sm:$0xff]  ;;  %v35_v15 = vld [vmem:[%s1980_s2 + $0x28] sm:$0xff] }
   0x5   :  { %50 = vperm.xlu1 %1606, %v32_v10   ;;  %v33_v13 = vld [vmem:[%s1980_s2 + $0x18] sm:$0xff]  ;;  %v36_v16 = vld [vmem:[%s1980_s2 + $0x30] sm:$0xff]  ;;  %v1297_v19 = vld [vmem:[%s1978_s0 + $0xc] sm:$0x7] }
   0x6   :  { %1423 = vmatmul.mubr.msk.bf16.vlgmr.msra.gmra.mrb[0].mxu0 %vm98_vm1, %v1657_v4  ;;  %v37_v17 = vld [vmem:[%s1980_s2 + $0x38] sm:$0xff]  ;;  %v196_v20 = vld [vmem:[%s1981_s4] sm:$0xff]  ;;  %v197_v21 = vld [vmem:[%s1981_s4 + $0x8] sm:$0xff]  ;;  %v571_v24 = vsel %vm111_vm0, %v1297_v19, 0 }
   0x7   :  { %1443 = vmatpush3.bf16.msra.mxu0 %v293_v6  ;;  %1426 = vmatprep.mubr.msk.bf16.mxu0 %vm98_vm1, %v1669_v7  ;;  %v198_v22 = vld [vmem:[%s1981_s4 + $0x10] sm:$0xff]  ;;  %v199_v23 = vld [vmem:[%s1981_s4 + $0x18] sm:$0xff]  ;;  %v1801_v33 = vld [vmem:[%s1982_s3] sm:$0xff]  }
   0x8   :  { %1598 = vmatprep.subr.msk.bf16.mxu0 %vm111_vm0, %v1290_v8  ;;  %45 = vperm.xlu0 %1605, %v31_v11   ;;  %v1304_v25 = vld [vmem:[%s1978_s0 + $0x10] sm:$0x7]  ;;  %v1311_v27 = vld [vmem:[%s1978_s0 + $0x14] sm:$0x7]  ;;  %v1318_v29 = vld [vmem:[%s1978_s0 + $0x18] sm:$0x7] }
   0x9   :  { %55 = vperm.xlu1 %1606, %v33_v13   ;;  %v710_v26 = vsel %vm111_vm0, %v1304_v25, 0  ;;  %v849_v28 = vsel %vm111_vm0, %v1311_v27, 0  ;;  %v988_v30 = vsel %vm111_vm0, %v1318_v29, 0  ;;  %v1325_v31 = vld [vmem:[%s1978_s0 + $0x1c] sm:$0x7]  ;;  %1438 = vmatprep.mubr.msk.bf16.mxu1 %vm230_vm2, %v1801_v33 }
   0xa   :  { %v1127_v32 = vsel %vm111_vm0, %v1325_v31, 0 }
   0xc   :  { %60 = vperm.xlu0 %1605, %v34_v14  }
   0xd   :  { %65 = vperm.xlu1 %1606, %v35_v15  }
   0xe   :  { %1427 = vmatmul.mubr.msk.bf16.gmra.mrb[4].mxu0 %vm98_vm1, %v1691_v12 }
   0xf   :  { %1444 = vmatprep.mubr.msk.bf16.mxu0 %vm98_vm1, %v1652_v3 }
  0x10   :  { %70 = vperm.xlu0 %1605, %v36_v16  }
  0x11   :  { %75 = vperm.xlu1 %1606, %v37_v17  }
  0x14   :  { %202 = vperm.xlu0 %1605, %v196_v20  }
  0x15   :  { %207 = vperm.xlu1 %1606, %v197_v21  }
  0x16   :  { %1445 = vmatmul.mubr.msk.bf16.vlgmr.msra.gmra.mrb[8].mxu0 %vm98_vm1, %v1657_v4 }
  0x17   :  { %1465 = vmatpush3.bf16.msra.mxu0 %v432_v18  ;;  %1448 = vmatprep.mubr.msk.bf16.mxu0 %vm98_vm1, %v1669_v7  ;;  %v1842_v18 = vld [vmem:[%s1982_s3 + $0x8] sm:$0xff]  }
  0x18   :  { %1599 = vmatprep.subr.msk.bf16.mxu0 %vm111_vm0, %v1297_v19  ;;  %212 = vperm.xlu0 %1605, %v198_v22  }
  0x19   :  { %217 = vperm.xlu1 %1606, %v199_v23  }
  0x1e   :  { %1449 = vmatmul.mubr.msk.bf16.gmra.mrb[12].mxu0 %vm98_vm1, %v1691_v12 }
  0x1f   :  { %1466 = vmatprep.mubr.msk.bf16.mxu0 %vm98_vm1, %v1652_v3 }
  0x26   :  { %1467 = vmatmul.mubr.msk.bf16.vlgmr.msra.gmra.mrb[16].mxu0 %vm98_vm1, %v1657_v4 }
  0x27   :  { %1487 = vmatpush3.bf16.msra.mxu0 %v571_v24  ;;  %1470 = vmatprep.mubr.msk.bf16.mxu0 %vm98_vm1, %v1669_v7 }
  0x28   :  { %1600 = vmatprep.subr.msk.bf16.mxu0 %vm111_vm0, %v1304_v25 }
  0x2e   :  { %1471 = vmatmul.mubr.msk.bf16.gmra.mrb[20].mxu0 %vm98_vm1, %v1691_v12 }
  0x2f   :  { %1488 = vmatprep.mubr.msk.bf16.mxu0 %vm98_vm1, %v1652_v3 }
  0x36   :  { %1489 = vmatmul.mubr.msk.bf16.vlgmr.msra.gmra.mrb[24].mxu0 %vm98_vm1, %v1657_v4 }
  0x37   :  { %1509 = vmatpush3.bf16.msra.mxu0 %v710_v26  ;;  %1492 = vmatprep.mubr.msk.bf16.mxu0 %vm98_vm1, %v1669_v7 }
  0x38   :  { %1601 = vmatprep.subr.msk.bf16.mxu0 %vm111_vm0, %v1311_v27 }
  0x3e   :  { %1493 = vmatmul.mubr.msk.bf16.gmra.mrb[28].mxu0 %vm98_vm1, %v1691_v12 }
  0x3f   :  { %1510 = vmatprep.mubr.msk.bf16.mxu0 %vm98_vm1, %v1652_v3 }
  0x46   :  { %1511 = vmatmul.mubr.msk.bf16.vlgmr.msra.gmra.mrb[32].mxu0 %vm98_vm1, %v1657_v4 }
  0x47   :  { %1531 = vmatpush3.bf16.msra.mxu0 %v849_v28  ;;  %1514 = vmatprep.mubr.msk.bf16.mxu0 %vm98_vm1, %v1669_v7 }
  0x48   :  { %1602 = vmatprep.subr.msk.bf16.mxu0 %vm111_vm0, %v1318_v29 }
  0x4e   :  { %1515 = vmatmul.mubr.msk.bf16.gmra.mrb[36].mxu0 %vm98_vm1, %v1691_v12 }
  0x4f   :  { %1532 = vmatprep.mubr.msk.bf16.mxu0 %vm98_vm1, %v1652_v3 }
  0x56   :  { %1533 = vmatmul.mubr.msk.bf16.vlgmr.msra.gmra.mrb[40].mxu0 %vm98_vm1, %v1657_v4 }
  0x57   :  { %1553 = vmatpush3.bf16.msra.mxu0 %v988_v30  ;;  %1536 = vmatprep.mubr.msk.bf16.mxu0 %vm98_vm1, %v1669_v7 }
  0x58   :  { %1603 = vmatprep.subr.msk.bf16.mxu0 %vm111_vm0, %v1325_v31 }
  0x5e   :  { %1537 = vmatmul.mubr.msk.bf16.gmra.mrb[44].mxu0 %vm98_vm1, %v1691_v12 }
  0x5f   :  { %1554 = vmatprep.mubr.msk.bf16.mxu0 %vm98_vm1, %v1652_v3 }
  0x66   :  { %1555 = vmatmul.mubr.msk.bf16.vlgmr.msra.gmra.mrb[48].mxu0 %vm98_vm1, %v1657_v4 }
  0x67   :  { %1575 = vmatpush3.bf16.msra.mxu0 %v1127_v32  ;;  %1558 = vmatprep.mubr.msk.bf16.mxu0 %vm98_vm1, %v1669_v7 }
  0x6e   :  { %1559 = vmatmul.mubr.msk.bf16.gmra.mrb[52].mxu0 %vm98_vm1, %v1691_v12 }
  0x6f   :  { %1576 = vmatprep.mubr.msk.bf16.mxu0 %vm98_vm1, %v1652_v3 }
  0x76   :  { %1577 = vmatmul.mubr.msk.bf16.vlgmr.msra.gmra.mrb[56].mxu0 %vm98_vm1, %v1657_v4 }
  0x77   :  { %1580 = vmatprep.mubr.msk.bf16.mxu0 %vm98_vm1, %v1669_v7 }
  0x7e   :  { %1581 = vmatmul.mubr.msk.bf16.gmra.mrb[60].mxu0 %vm98_vm1, %v1691_v12 }
  0x83   :  { %v1811_v34 = vpop.permute.xlu0 %40 }
  0x84   :  { %v1813_v35 = vpop.permute.xlu1 %50 }
  0x87   :  { %v1815_v36 = vpop.permute.xlu0 %45 }
  0x88   :  { %v1817_v37 = vpop.permute.xlu1 %55 }
  0x8b   :  { %v1820_v41 = vpop.permute.xlu0 %60 }
  0x8c   :  { %v1824_v46 = vpop.permute.xlu1 %65 }
  0x8f   :  { %v1827_v53 = vpop.permute.xlu0 %70 }
  0x90   :  { %v1830_v58 = vpop.permute.xlu1 %75 }
  0xd9   :  { %v1424_v38 = vpop.f32.mrb[0].mxu0 }
  0xda   :  { %v158_v39 = vadd.f32 %v1424_v38, %v1813_v35  ;;  %v149_v40 = vpop.f32.mrb[1].mxu0 }
  0xdb   :  { %v150_v42 = vadd.f32 %v149_v40, %v1811_v34  ;;  %v1425_v43 = vpop.f32.mrb[2].mxu0 }
  0xdc   :  { %v161_v44 = vadd.f32 %v1425_v43, %v1817_v37  ;;  %v152_v45 = vpop.f32.mrb[3].mxu0  ;;  %v182_v48 = vmax.f32 %v158_v39, 0.0 }
  0xdd   :  { %v153_v47 = vadd.f32 %v152_v45, %v1815_v36  ;;  %v180_v50 = vmax.f32 %v150_v42, 0.0 }
  0xde   :  { %v183_v49 = vmax.f32 %v161_v44, 0.0 }
  0xdf   :  { %v181_v51 = vmax.f32 %v153_v47, 0.0 }
  0xe0   :  { %v189_v52 = vpack.c.bf16 %v183_v49, %v182_v48 }
  0xe1   :  { %v1428_v54 = vpop.f32.mrb[4].mxu0  ;;  %v188_v55 = vpack.c.bf16 %v181_v51, %v180_v50 }
  0xe2   :  { %v174_v56 = vadd.f32 %v1428_v54, %v1827_v53  ;;  %v165_v57 = vpop.f32.mrb[5].mxu0 }
  0xe3   :  { %v166_v59 = vadd.f32 %v165_v57, %v1820_v41  ;;  %v1429_v60 = vpop.f32.mrb[6].mxu0  ;;  %1430 = vmatprep.subr.bf16.mxu1 %v188_v55 }
  0xe4   :  { %v177_v61 = vadd.f32 %v1429_v60, %v1830_v58  ;;  %v168_v62 = vpop.f32.mrb[7].mxu0  ;;  %1431 = vmatpush3.bf16.msra.mxu1 %v188_v55  ;;  %v186_v0 = vmax.f32 %v174_v56, 0.0 }
  0xe5   :  { %v169_v63 = vadd.f32 %v168_v62, %v1824_v46  ;;  %1432 = vmatprep.subr.bf16.mxu1 %v189_v52  ;;  %v184_v2 = vmax.f32 %v166_v59, 0.0 }
  0xe6   :  { %v187_v1 = vmax.f32 %v177_v61, 0.0 }
  0xe7   :  { %v185_v3 = vmax.f32 %v169_v63, 0.0 }
  0xe8   :  { %v191_v4 = vpack.c.bf16 %v187_v1, %v186_v0  ;;  %1433 = vmatpush3.bf16.msra.mxu1 %v189_v52 }
  0xe9   :  { %v190_v5 = vpack.c.bf16 %v185_v3, %v184_v2  ;;  %v1446_v6 = vpop.f32.mrb[8].mxu0 }
  0xea   :  { %v338_v7 = vadd.f32 %v1446_v6, %v1813_v35  ;;  %v329_v8 = vpop.f32.mrb[9].mxu0 }
  0xeb   :  { %v330_v9 = vadd.f32 %v329_v8, %v1811_v34  ;;  %1434 = vmatprep.subr.bf16.mxu1 %v190_v5  ;;  %v1447_v10 = vpop.f32.mrb[10].mxu0 }
  0xec   :  { %v341_v11 = vadd.f32 %v1447_v10, %v1817_v37  ;;  %1435 = vmatpush3.bf16.msra.mxu1 %v190_v5  ;;  %v332_v12 = vpop.f32.mrb[11].mxu0  ;;  %v362_v14 = vmax.f32 %v338_v7, 0.0 }
  0xed   :  { %v333_v13 = vadd.f32 %v332_v12, %v1815_v36  ;;  %1436 = vmatprep.subr.bf16.mxu1 %v191_v4  ;;  %v360_v16 = vmax.f32 %v330_v9, 0.0 }
  0xee   :  { %v363_v15 = vmax.f32 %v341_v11, 0.0 }
  0xef   :  { %v361_v17 = vmax.f32 %v333_v13, 0.0 }
  0xf0   :  { %v369_v19 = vpack.c.bf16 %v363_v15, %v362_v14  ;;  %1437 = vmatpush3.bf16.msra.mxu1 %v191_v4 }
  0xf1   :  { %v368_v20 = vpack.c.bf16 %v361_v17, %v360_v16  ;;  %v1450_v21 = vpop.f32.mrb[12].mxu0 }
  0xf2   :  { %v354_v22 = vadd.f32 %v1450_v21, %v1827_v53  ;;  %v345_v23 = vpop.f32.mrb[13].mxu0 }
  0xf3   :  { %v346_v24 = vadd.f32 %v345_v23, %v1820_v41  ;;  %1439 = vmatmul.mubr.msk.bf16.vlgmr.msra.gmra.mrb[0].mxu1 %vm230_vm2, %v1842_v18  ;;  %v1451_v25 = vpop.f32.mrb[14].mxu0  ;;  %1452 = vmatprep.subr.bf16.mxu1 %v368_v20 }
  0xf4   :  { %v357_v26 = vadd.f32 %v1451_v25, %v1830_v58  ;;  %v348_v27 = vpop.f32.mrb[15].mxu0  ;;  %1453 = vmatpush3.bf16.msra.mxu1 %v368_v20  ;;  %1460 = vmatprep.mubr.msk.bf16.mxu1 %vm230_vm2, %v1801_v33  ;;  %v366_v29 = vmax.f32 %v354_v22, 0.0 }
  0xf5   :  { %v349_v28 = vadd.f32 %v348_v27, %v1824_v46  ;;  %1454 = vmatprep.subr.bf16.mxu1 %v369_v19  ;;  %v364_v31 = vmax.f32 %v346_v24, 0.0 }
  0xf6   :  { %v367_v30 = vmax.f32 %v357_v26, 0.0 }
  0xf7   :  { %v365_v32 = vmax.f32 %v349_v28, 0.0 }
  0xf8   :  { %v371_v38 = vpack.c.bf16 %v367_v30, %v366_v29  ;;  %1455 = vmatpush3.bf16.msra.mxu1 %v369_v19 }
  0xf9   :  { %v370_v39 = vpack.c.bf16 %v365_v32, %v364_v31  ;;  %v1468_v40 = vpop.f32.mrb[16].mxu0 }
  0xfa   :  { %v477_v42 = vadd.f32 %v1468_v40, %v1813_v35  ;;  %v468_v43 = vpop.f32.mrb[17].mxu0 }
  0xfb   :  { %v469_v44 = vadd.f32 %v468_v43, %v1811_v34  ;;  %1456 = vmatprep.subr.bf16.mxu1 %v370_v39  ;;  %v1469_v45 = vpop.f32.mrb[18].mxu0 }
  0xfc   :  { %v480_v47 = vadd.f32 %v1469_v45, %v1817_v37  ;;  %1457 = vmatpush3.bf16.msra.mxu1 %v370_v39  ;;  %v471_v48 = vpop.f32.mrb[19].mxu0  ;;  %v501_v50 = vmax.f32 %v477_v42, 0.0 }
  0xfd   :  { %v472_v49 = vadd.f32 %v471_v48, %v1815_v36  ;;  %1458 = vmatprep.subr.bf16.mxu1 %v371_v38  ;;  %v499_v52 = vmax.f32 %v469_v44, 0.0 }
  0xfe   :  { %v502_v51 = vmax.f32 %v480_v47, 0.0 }
  0xff   :  { %v500_v54 = vmax.f32 %v472_v49, 0.0 }
 0x100   :  { %v508_v55 = vpack.c.bf16 %v502_v51, %v501_v50  ;;  %1459 = vmatpush3.bf16.msra.mxu1 %v371_v38 }
 0x101   :  { %v507_v56 = vpack.c.bf16 %v500_v54, %v499_v52  ;;  %v1472_v57 = vpop.f32.mrb[20].mxu0 }
 0x102   :  { %v493_v59 = vadd.f32 %v1472_v57, %v1827_v53  ;;  %v484_v60 = vpop.f32.mrb[21].mxu0 }
 0x103   :  { %v485_v61 = vadd.f32 %v484_v60, %v1820_v41  ;;  %1461 = vmatmul.mubr.msk.bf16.vlgmr.msra.gmra.mrb[4].mxu1 %vm230_vm2, %v1842_v18  ;;  %v1473_v62 = vpop.f32.mrb[22].mxu0  ;;  %1474 = vmatprep.subr.bf16.mxu1 %v507_v56 }
 0x104   :  { %v496_v63 = vadd.f32 %v1473_v62, %v1830_v58  ;;  %v487_v0 = vpop.f32.mrb[23].mxu0  ;;  %1475 = vmatpush3.bf16.msra.mxu1 %v507_v56  ;;  %1482 = vmatprep.mubr.msk.bf16.mxu1 %vm230_vm2, %v1801_v33  ;;  %v505_v2 = vmax.f32 %v493_v59, 0.0 }
 0x105   :  { %v488_v1 = vadd.f32 %v487_v0, %v1824_v46  ;;  %1476 = vmatprep.subr.bf16.mxu1 %v508_v55  ;;  %v503_v4 = vmax.f32 %v485_v61, 0.0 }
 0x106   :  { %v506_v3 = vmax.f32 %v496_v63, 0.0 }
 0x107   :  { %v504_v5 = vmax.f32 %v488_v1, 0.0 }
 0x108   :  { %v510_v6 = vpack.c.bf16 %v506_v3, %v505_v2  ;;  %1477 = vmatpush3.bf16.msra.mxu1 %v508_v55 }
 0x109   :  { %v509_v7 = vpack.c.bf16 %v504_v5, %v503_v4  ;;  %v1490_v8 = vpop.f32.mrb[24].mxu0 }
 0x10a   :  { %v616_v9 = vadd.f32 %v1490_v8, %v1813_v35  ;;  %v607_v10 = vpop.f32.mrb[25].mxu0 }
 0x10b   :  { %v608_v11 = vadd.f32 %v607_v10, %v1811_v34  ;;  %1478 = vmatprep.subr.bf16.mxu1 %v509_v7  ;;  %v1491_v12 = vpop.f32.mrb[26].mxu0 }
 0x10c   :  { %v619_v13 = vadd.f32 %v1491_v12, %v1817_v37  ;;  %1479 = vmatpush3.bf16.msra.mxu1 %v509_v7  ;;  %v610_v14 = vpop.f32.mrb[27].mxu0  ;;  %v640_v16 = vmax.f32 %v616_v9, 0.0 }
 0x10d   :  { %v611_v15 = vadd.f32 %v610_v14, %v1815_v36  ;;  %1480 = vmatprep.subr.bf16.mxu1 %v510_v6  ;;  %v638_v19 = vmax.f32 %v608_v11, 0.0 }
 0x10e   :  { %v641_v17 = vmax.f32 %v619_v13, 0.0 }
 0x10f   :  { %v639_v20 = vmax.f32 %v611_v15, 0.0 }
 0x110   :  { %v647_v21 = vpack.c.bf16 %v641_v17, %v640_v16  ;;  %1481 = vmatpush3.bf16.msra.mxu1 %v510_v6 }
 0x111   :  { %v646_v22 = vpack.c.bf16 %v639_v20, %v638_v19  ;;  %v1494_v23 = vpop.f32.mrb[28].mxu0 }
 0x112   :  { %v632_v24 = vadd.f32 %v1494_v23, %v1827_v53  ;;  %v623_v25 = vpop.f32.mrb[29].mxu0 }
 0x113   :  { %v624_v26 = vadd.f32 %v623_v25, %v1820_v41  ;;  %1483 = vmatmul.mubr.msk.bf16.vlgmr.msra.gmra.mrb[8].mxu1 %vm230_vm2, %v1842_v18  ;;  %v1495_v27 = vpop.f32.mrb[30].mxu0  ;;  %1496 = vmatprep.subr.bf16.mxu1 %v646_v22 }
 0x114   :  { %v635_v28 = vadd.f32 %v1495_v27, %v1830_v58  ;;  %v626_v29 = vpop.f32.mrb[31].mxu0  ;;  %1497 = vmatpush3.bf16.msra.mxu1 %v646_v22  ;;  %1504 = vmatprep.mubr.msk.bf16.mxu1 %vm230_vm2, %v1801_v33  ;;  %v644_v31 = vmax.f32 %v632_v24, 0.0 }
 0x115   :  { %v627_v30 = vadd.f32 %v626_v29, %v1824_v46  ;;  %1498 = vmatprep.subr.bf16.mxu1 %v647_v21  ;;  %v642_v38 = vmax.f32 %v624_v26, 0.0 }
 0x116   :  { %v645_v32 = vmax.f32 %v635_v28, 0.0 }
 0x117   :  { %v643_v39 = vmax.f32 %v627_v30, 0.0 }
 0x118   :  { %v649_v40 = vpack.c.bf16 %v645_v32, %v644_v31  ;;  %1499 = vmatpush3.bf16.msra.mxu1 %v647_v21 }
 0x119   :  { %v648_v42 = vpack.c.bf16 %v643_v39, %v642_v38  ;;  %v1512_v43 = vpop.f32.mrb[32].mxu0 }
 0x11a   :  { %v755_v44 = vadd.f32 %v1512_v43, %v1813_v35  ;;  %v746_v45 = vpop.f32.mrb[33].mxu0 }
 0x11b   :  { %v747_v47 = vadd.f32 %v746_v45, %v1811_v34  ;;  %1500 = vmatprep.subr.bf16.mxu1 %v648_v42  ;;  %v1513_v48 = vpop.f32.mrb[34].mxu0 }
 0x11c   :  { %v758_v49 = vadd.f32 %v1513_v48, %v1817_v37  ;;  %1501 = vmatpush3.bf16.msra.mxu1 %v648_v42  ;;  %v749_v50 = vpop.f32.mrb[35].mxu0  ;;  %v779_v52 = vmax.f32 %v755_v44, 0.0 }
 0x11d   :  { %v750_v51 = vadd.f32 %v749_v50, %v1815_v36  ;;  %1502 = vmatprep.subr.bf16.mxu1 %v649_v40  ;;  %v777_v55 = vmax.f32 %v747_v47, 0.0 }
 0x11e   :  { %v780_v54 = vmax.f32 %v758_v49, 0.0 }
 0x11f   :  { %v778_v56 = vmax.f32 %v750_v51, 0.0 }
 0x120   :  { %v786_v57 = vpack.c.bf16 %v780_v54, %v779_v52  ;;  %1503 = vmatpush3.bf16.msra.mxu1 %v649_v40 }
 0x121   :  { %v785_v59 = vpack.c.bf16 %v778_v56, %v777_v55  ;;  %v1516_v60 = vpop.f32.mrb[36].mxu0 }
 0x122   :  { %v771_v61 = vadd.f32 %v1516_v60, %v1827_v53  ;;  %v762_v62 = vpop.f32.mrb[37].mxu0 }
 0x123   :  { %v763_v63 = vadd.f32 %v762_v62, %v1820_v41  ;;  %1505 = vmatmul.mubr.msk.bf16.vlgmr.msra.gmra.mrb[12].mxu1 %vm230_vm2, %v1842_v18  ;;  %v1517_v0 = vpop.f32.mrb[38].mxu0  ;;  %1518 = vmatprep.subr.bf16.mxu1 %v785_v59 }
 0x124   :  { %v774_v1 = vadd.f32 %v1517_v0, %v1830_v58  ;;  %v765_v2 = vpop.f32.mrb[39].mxu0  ;;  %1519 = vmatpush3.bf16.msra.mxu1 %v785_v59  ;;  %1526 = vmatprep.mubr.msk.bf16.mxu1 %vm230_vm2, %v1801_v33  ;;  %v783_v4 = vmax.f32 %v771_v61, 0.0 }
 0x125   :  { %v766_v3 = vadd.f32 %v765_v2, %v1824_v46  ;;  %1520 = vmatprep.subr.bf16.mxu1 %v786_v57  ;;  %v781_v6 = vmax.f32 %v763_v63, 0.0 }
 0x126   :  { %v784_v5 = vmax.f32 %v774_v1, 0.0 }
 0x127   :  { %v782_v7 = vmax.f32 %v766_v3, 0.0 }
 0x128   :  { %v788_v8 = vpack.c.bf16 %v784_v5, %v783_v4  ;;  %1521 = vmatpush3.bf16.msra.mxu1 %v786_v57 }
 0x129   :  { %v787_v9 = vpack.c.bf16 %v782_v7, %v781_v6  ;;  %v1534_v10 = vpop.f32.mrb[40].mxu0 }
 0x12a   :  { %v894_v11 = vadd.f32 %v1534_v10, %v1813_v35  ;;  %v885_v12 = vpop.f32.mrb[41].mxu0 }
 0x12b   :  { %v886_v13 = vadd.f32 %v885_v12, %v1811_v34  ;;  %1522 = vmatprep.subr.bf16.mxu1 %v787_v9  ;;  %v1535_v14 = vpop.f32.mrb[42].mxu0 }
 0x12c   :  { %v897_v15 = vadd.f32 %v1535_v14, %v1817_v37  ;;  %1523 = vmatpush3.bf16.msra.mxu1 %v787_v9  ;;  %v888_v16 = vpop.f32.mrb[43].mxu0  ;;  %v918_v19 = vmax.f32 %v894_v11, 0.0 }
 0x12d   :  { %v889_v17 = vadd.f32 %v888_v16, %v1815_v36  ;;  %1524 = vmatprep.subr.bf16.mxu1 %v788_v8  ;;  %v916_v21 = vmax.f32 %v886_v13, 0.0 }
 0x12e   :  { %v919_v20 = vmax.f32 %v897_v15, 0.0 }
 0x12f   :  { %v917_v22 = vmax.f32 %v889_v17, 0.0 }
 0x130   :  { %v925_v23 = vpack.c.bf16 %v919_v20, %v918_v19  ;;  %1525 = vmatpush3.bf16.msra.mxu1 %v788_v8 }
 0x131   :  { %v924_v24 = vpack.c.bf16 %v917_v22, %v916_v21  ;;  %v1538_v25 = vpop.f32.mrb[44].mxu0 }
 0x132   :  { %v910_v26 = vadd.f32 %v1538_v25, %v1827_v53  ;;  %v901_v27 = vpop.f32.mrb[45].mxu0 }
 0x133   :  { %v902_v28 = vadd.f32 %v901_v27, %v1820_v41  ;;  %1527 = vmatmul.mubr.msk.bf16.vlgmr.msra.gmra.mrb[16].mxu1 %vm230_vm2, %v1842_v18  ;;  %v1539_v29 = vpop.f32.mrb[46].mxu0  ;;  %1540 = vmatprep.subr.bf16.mxu1 %v924_v24 }
 0x134   :  { %v913_v30 = vadd.f32 %v1539_v29, %v1830_v58  ;;  %v904_v31 = vpop.f32.mrb[47].mxu0  ;;  %1541 = vmatpush3.bf16.msra.mxu1 %v924_v24  ;;  %1548 = vmatprep.mubr.msk.bf16.mxu1 %vm230_vm2, %v1801_v33  ;;  %v922_v38 = vmax.f32 %v910_v26, 0.0 }
 0x135   :  { %v905_v32 = vadd.f32 %v904_v31, %v1824_v46  ;;  %1542 = vmatprep.subr.bf16.mxu1 %v925_v23  ;;  %v920_v40 = vmax.f32 %v902_v28, 0.0 }
 0x136   :  { %v923_v39 = vmax.f32 %v913_v30, 0.0 }
 0x137   :  { %v921_v42 = vmax.f32 %v905_v32, 0.0 }
 0x138   :  { %v927_v43 = vpack.c.bf16 %v923_v39, %v922_v38  ;;  %1543 = vmatpush3.bf16.msra.mxu1 %v925_v23 }
 0x139   :  { %v926_v44 = vpack.c.bf16 %v921_v42, %v920_v40  ;;  %v1556_v45 = vpop.f32.mrb[48].mxu0 }
 0x13a   :  { %v1033_v47 = vadd.f32 %v1556_v45, %v1813_v35  ;;  %v1024_v48 = vpop.f32.mrb[49].mxu0 }
 0x13b   :  { %v1025_v49 = vadd.f32 %v1024_v48, %v1811_v34  ;;  %1544 = vmatprep.subr.bf16.mxu1 %v926_v44  ;;  %v1557_v50 = vpop.f32.mrb[50].mxu0 }
 0x13c   :  { %v1036_v51 = vadd.f32 %v1557_v50, %v1817_v37  ;;  %1545 = vmatpush3.bf16.msra.mxu1 %v926_v44  ;;  %v1027_v52 = vpop.f32.mrb[51].mxu0  ;;  %v1057_v55 = vmax.f32 %v1033_v47, 0.0 }
 0x13d   :  { %v1028_v54 = vadd.f32 %v1027_v52, %v1815_v36  ;;  %1546 = vmatprep.subr.bf16.mxu1 %v927_v43  ;;  %v1055_v57 = vmax.f32 %v1025_v49, 0.0 }
 0x13e   :  { %v1058_v56 = vmax.f32 %v1036_v51, 0.0 }
 0x13f   :  { %v1056_v59 = vmax.f32 %v1028_v54, 0.0 }
 0x140   :  { %v1064_v60 = vpack.c.bf16 %v1058_v56, %v1057_v55  ;;  %1547 = vmatpush3.bf16.msra.mxu1 %v927_v43  ;;  %v1928_v43 = vpop.permute.xlu1 %207 }
 0x141   :  { %v1063_v61 = vpack.c.bf16 %v1056_v59, %v1055_v57  ;;  %v1560_v62 = vpop.f32.mrb[52].mxu0 }
 0x142   :  { %v1049_v63 = vadd.f32 %v1560_v62, %v1827_v53  ;;  %v1040_v0 = vpop.f32.mrb[53].mxu0 }
 0x143   :  { %v1041_v1 = vadd.f32 %v1040_v0, %v1820_v41  ;;  %1549 = vmatmul.mubr.msk.bf16.vlgmr.msra.gmra.mrb[20].mxu1 %vm230_vm2, %v1842_v18  ;;  %v1561_v2 = vpop.f32.mrb[54].mxu0  ;;  %1562 = vmatprep.subr.bf16.mxu1 %v1063_v61 }
 0x144   :  { %v1052_v3 = vadd.f32 %v1561_v2, %v1830_v58  ;;  %v1043_v4 = vpop.f32.mrb[55].mxu0  ;;  %1563 = vmatpush3.bf16.msra.mxu1 %v1063_v61  ;;  %1570 = vmatprep.mubr.msk.bf16.mxu1 %vm230_vm2, %v1801_v33  ;;  %v1061_v6 = vmax.f32 %v1049_v63, 0.0  ;;  %v1933_v47 = vpop.permute.xlu1 %217 }
 0x145   :  { %v1044_v5 = vadd.f32 %v1043_v4, %v1824_v46  ;;  %1564 = vmatprep.subr.bf16.mxu1 %v1064_v60  ;;  %v1059_v8 = vmax.f32 %v1041_v1, 0.0 }
 0x146   :  { %v1062_v7 = vmax.f32 %v1052_v3, 0.0 }
 0x147   :  { %v1060_v9 = vmax.f32 %v1044_v5, 0.0 }
 0x148   :  { %v1066_v10 = vpack.c.bf16 %v1062_v7, %v1061_v6  ;;  %1565 = vmatpush3.bf16.msra.mxu1 %v1064_v60 }
 0x149   :  { %v1065_v11 = vpack.c.bf16 %v1060_v9, %v1059_v8  ;;  %v1578_v12 = vpop.f32.mrb[56].mxu0 }
 0x14a   :  { %v1172_v13 = vadd.f32 %v1578_v12, %v1813_v35  ;;  %v1163_v14 = vpop.f32.mrb[57].mxu0 }
 0x14b   :  { %v1164_v15 = vadd.f32 %v1163_v14, %v1811_v34  ;;  %1566 = vmatprep.subr.bf16.mxu1 %v1065_v11  ;;  %v1579_v16 = vpop.f32.mrb[58].mxu0 }
 0x14c   :  { %v1175_v17 = vadd.f32 %v1579_v16, %v1817_v37  ;;  %1567 = vmatpush3.bf16.msra.mxu1 %v1065_v11  ;;  %v1166_v19 = vpop.f32.mrb[59].mxu0  ;;  %v1196_v21 = vmax.f32 %v1172_v13, 0.0 }
 0x14d   :  { %v1167_v20 = vadd.f32 %v1166_v19, %v1815_v36  ;;  %1568 = vmatprep.subr.bf16.mxu1 %v1066_v10  ;;  %v1194_v23 = vmax.f32 %v1164_v15, 0.0 }
 0x14e   :  { %v1197_v22 = vmax.f32 %v1175_v17, 0.0 }
 0x14f   :  { %v1195_v24 = vmax.f32 %v1167_v20, 0.0 }
 0x150   :  { %v1203_v25 = vpack.c.bf16 %v1197_v22, %v1196_v21  ;;  %1569 = vmatpush3.bf16.msra.mxu1 %v1066_v10 }
 0x151   :  { %v1202_v26 = vpack.c.bf16 %v1195_v24, %v1194_v23  ;;  %v1582_v35 = vpop.f32.mrb[60].mxu0 }
 0x152   :  { %v1188_v27 = vadd.f32 %v1582_v35, %v1827_v53  ;;  %v1179_v34 = vpop.f32.mrb[61].mxu0 }
 0x153   :  { %v1180_v28 = vadd.f32 %v1179_v34, %v1820_v41  ;;  %1571 = vmatmul.mubr.msk.bf16.vlgmr.msra.gmra.mrb[24].mxu1 %vm230_vm2, %v1842_v18  ;;  %v1583_v37 = vpop.f32.mrb[62].mxu0  ;;  %1584 = vmatprep.subr.bf16.mxu1 %v1202_v26 }
 0x154   :  { %v1191_v36 = vadd.f32 %v1583_v37, %v1830_v58  ;;  %v1182_v29 = vpop.f32.mrb[63].mxu0  ;;  %1585 = vmatpush3.bf16.msra.mxu1 %v1202_v26  ;;  %1592 = vmatprep.mubr.msk.bf16.mxu1 %vm230_vm2, %v1801_v33  ;;  %v1200_v31 = vmax.f32 %v1188_v27, 0.0 }
 0x155   :  { %v1183_v30 = vadd.f32 %v1182_v29, %v1824_v46  ;;  %1586 = vmatprep.subr.bf16.mxu1 %v1203_v25  ;;  %v1198_v32 = vmax.f32 %v1180_v28, 0.0  ;;  %v1926_v46 = vpop.permute.xlu0 %202 }
 0x156   :  { %v1201_v53 = vmax.f32 %v1191_v36, 0.0 }
 0x157   :  { %v1199_v38 = vmax.f32 %v1183_v30, 0.0 }
 0x158   :  { %v1205_v41 = vpack.c.bf16 %v1201_v53, %v1200_v31  ;;  %1587 = vmatpush3.bf16.msra.mxu1 %v1203_v25 }
 0x159   :  { %v1204_v39 = vpack.c.bf16 %v1199_v38, %v1198_v32  ;;  %v1930_v44 = vpop.permute.xlu0 %212 }
 0x15b   :  { %1588 = vmatprep.subr.bf16.mxu1 %v1204_v39 }
 0x15c   :  { %1589 = vmatpush3.bf16.msra.mxu1 %v1204_v39 }
 0x15d   :  { %1590 = vmatprep.subr.bf16.mxu1 %v1205_v41 }
 0x160   :  { %1591 = vmatpush3.bf16.msra.mxu1 %v1205_v41 }
 0x163   :  { %1593 = vmatmul.mubr.msk.bf16.vlgmr.msra.gmra.mrb[28].mxu1 %vm230_vm2, %v1842_v18 }
 0x1c6   :  { %v1440_v58 = vpop.f32.mrb[0].mxu1 }
 0x1c7   :  { %v271_v40 = vpop.f32.mrb[1].mxu1  ;;  %v280_v45 = vadd.f32 %v1440_v58, %v1930_v44 }
 0x1c8   :  { %v1441_v33 = vpop.f32.mrb[2].mxu1  ;;  %v272_v48 = vadd.f32 %v271_v40, %v1926_v46 }
 0x1c9   :  { %v274_v42 = vpop.f32.mrb[3].mxu1  ;;  %v283_v50 = vadd.f32 %v1441_v33, %v1933_v47  ;;  %v288_v56 = vmax.f32 %v280_v45, 0.0 }
 0x1ca   :  { %v275_v52 = vadd.f32 %v274_v42, %v1928_v43  ;;  %v286_v61 = vmax.f32 %v272_v48, 0.0 }
 0x1cb   :  { %v289_v0 = vmax.f32 %v283_v50, 0.0 }
 0x1cc   :  { %v287_v3 = vmax.f32 %v275_v52, 0.0 }
 0x1d6   :  { %v1462_v49 = vpop.f32.mrb[4].mxu1 }
 0x1d7   :  { %v415_v18 = vadd.f32 %v1462_v49, %v1930_v44  ;;  %v406_v51 = vpop.f32.mrb[5].mxu1 }
 0x1d8   :  { %v407_v54 = vadd.f32 %v406_v51, %v1926_v46  ;;  %v1463_v55 = vpop.f32.mrb[6].mxu1 }
 0x1d9   :  { %v423_v57 = vmax.f32 %v415_v18, 0.0  ;;  %v418_v59 = vadd.f32 %v1463_v55, %v1933_v47  ;;  %v409_v60 = vpop.f32.mrb[7].mxu1 }
 0x1da   :  { %v421_v62 = vmax.f32 %v407_v54, 0.0  ;;  %v410_v63 = vadd.f32 %v409_v60, %v1928_v43 }
 0x1db   :  { %v427_v1 = vmax.f32 %v288_v56, %v423_v57  ;;  %v424_v2 = vmax.f32 %v418_v59, 0.0 }
 0x1dc   :  { %v425_v4 = vmax.f32 %v286_v61, %v421_v62  ;;  %v422_v5 = vmax.f32 %v410_v63, 0.0 }
 0x1dd   :  { %v428_v6 = vmax.f32 %v289_v0, %v424_v2 }
 0x1de   :  { %v426_v7 = vmax.f32 %v287_v3, %v422_v5 }
 0x1e6   :  { %v1484_v8 = vpop.f32.mrb[8].mxu1 }
 0x1e7   :  { %v554_v9 = vadd.f32 %v1484_v8, %v1930_v44  ;;  %v545_v10 = vpop.f32.mrb[9].mxu1 }
 0x1e8   :  { %v546_v11 = vadd.f32 %v545_v10, %v1926_v46  ;;  %v1485_v12 = vpop.f32.mrb[10].mxu1 }
 0x1e9   :  { %v562_v13 = vmax.f32 %v554_v9, 0.0  ;;  %v557_v14 = vadd.f32 %v1485_v12, %v1933_v47  ;;  %v548_v15 = vpop.f32.mrb[11].mxu1 }
 0x1ea   :  { %v560_v16 = vmax.f32 %v546_v11, 0.0  ;;  %v549_v17 = vadd.f32 %v548_v15, %v1928_v43 }
 0x1eb   :  { %v566_v19 = vmax.f32 %v427_v1, %v562_v13  ;;  %v563_v20 = vmax.f32 %v557_v14, 0.0 }
 0x1ec   :  { %v564_v21 = vmax.f32 %v425_v4, %v560_v16  ;;  %v561_v22 = vmax.f32 %v549_v17, 0.0 }
 0x1ed   :  { %v567_v23 = vmax.f32 %v428_v6, %v563_v20 }
 0x1ee   :  { %v565_v24 = vmax.f32 %v426_v7, %v561_v22 }
 0x1f6   :  { %v1506_v25 = vpop.f32.mrb[12].mxu1 }
 0x1f7   :  { %v693_v26 = vadd.f32 %v1506_v25, %v1930_v44  ;;  %v684_v35 = vpop.f32.mrb[13].mxu1 }
 0x1f8   :  { %v685_v27 = vadd.f32 %v684_v35, %v1926_v46  ;;  %v1507_v34 = vpop.f32.mrb[14].mxu1 }
 0x1f9   :  { %v701_v28 = vmax.f32 %v693_v26, 0.0  ;;  %v696_v37 = vadd.f32 %v1507_v34, %v1933_v47  ;;  %v687_v36 = vpop.f32.mrb[15].mxu1 }
 0x1fa   :  { %v699_v29 = vmax.f32 %v685_v27, 0.0  ;;  %v688_v30 = vadd.f32 %v687_v36, %v1928_v43 }
 0x1fb   :  { %v705_v31 = vmax.f32 %v566_v19, %v701_v28  ;;  %v702_v53 = vmax.f32 %v696_v37, 0.0 }
 0x1fc   :  { %v703_v32 = vmax.f32 %v564_v21, %v699_v29  ;;  %v700_v38 = vmax.f32 %v688_v30, 0.0 }
 0x1fd   :  { %v706_v41 = vmax.f32 %v567_v23, %v702_v53 }
 0x1fe   :  { %v704_v39 = vmax.f32 %v565_v24, %v700_v38 }
 0x206   :  { %v1528_v58 = vpop.f32.mrb[16].mxu1 }
 0x207   :  { %v832_v40 = vadd.f32 %v1528_v58, %v1930_v44  ;;  %v823_v33 = vpop.f32.mrb[17].mxu1 }
 0x208   :  { %v824_v42 = vadd.f32 %v823_v33, %v1926_v46  ;;  %v1529_v45 = vpop.f32.mrb[18].mxu1 }
 0x209   :  { %v840_v48 = vmax.f32 %v832_v40, 0.0  ;;  %v835_v49 = vadd.f32 %v1529_v45, %v1933_v47  ;;  %v826_v50 = vpop.f32.mrb[19].mxu1 }
 0x20a   :  { %v838_v18 = vmax.f32 %v824_v42, 0.0  ;;  %v827_v51 = vadd.f32 %v826_v50, %v1928_v43 }
 0x20b   :  { %v844_v52 = vmax.f32 %v705_v31, %v840_v48  ;;  %v841_v54 = vmax.f32 %v835_v49, 0.0 }
 0x20c   :  { %v842_v55 = vmax.f32 %v703_v32, %v838_v18  ;;  %v839_v56 = vmax.f32 %v827_v51, 0.0 }
 0x20d   :  { %v845_v57 = vmax.f32 %v706_v41, %v841_v54 }
 0x20e   :  { %v843_v59 = vmax.f32 %v704_v39, %v839_v56 }
 0x216   :  { %v1550_v60 = vpop.f32.mrb[20].mxu1 }
 0x217   :  { %v971_v61 = vadd.f32 %v1550_v60, %v1930_v44  ;;  %v962_v62 = vpop.f32.mrb[21].mxu1 }
 0x218   :  { %v963_v63 = vadd.f32 %v962_v62, %v1926_v46  ;;  %v1551_v0 = vpop.f32.mrb[22].mxu1 }
 0x219   :  { %v979_v1 = vmax.f32 %v971_v61, 0.0  ;;  %v974_v2 = vadd.f32 %v1551_v0, %v1933_v47  ;;  %v965_v3 = vpop.f32.mrb[23].mxu1 }
 0x21a   :  { %v977_v4 = vmax.f32 %v963_v63, 0.0  ;;  %v966_v5 = vadd.f32 %v965_v3, %v1928_v43 }
 0x21b   :  { %v983_v6 = vmax.f32 %v844_v52, %v979_v1  ;;  %v980_v7 = vmax.f32 %v974_v2, 0.0 }
 0x21c   :  { %v981_v8 = vmax.f32 %v842_v55, %v977_v4  ;;  %v978_v9 = vmax.f32 %v966_v5, 0.0 }
 0x21d   :  { %v984_v10 = vmax.f32 %v845_v57, %v980_v7 }
 0x21e   :  { %v982_v11 = vmax.f32 %v843_v59, %v978_v9 }
 0x226   :  { %v1572_v12 = vpop.f32.mrb[24].mxu1 }
 0x227   :  { %v1110_v13 = vadd.f32 %v1572_v12, %v1930_v44  ;;  %v1101_v14 = vpop.f32.mrb[25].mxu1 }
 0x228   :  { %v1102_v15 = vadd.f32 %v1101_v14, %v1926_v46  ;;  %v1573_v16 = vpop.f32.mrb[26].mxu1 }
 0x229   :  { %v1118_v17 = vmax.f32 %v1110_v13, 0.0  ;;  %v1113_v19 = vadd.f32 %v1573_v16, %v1933_v47  ;;  %v1104_v20 = vpop.f32.mrb[27].mxu1 }
 0x22a   :  { %v1116_v21 = vmax.f32 %v1102_v15, 0.0  ;;  %v1105_v22 = vadd.f32 %v1104_v20, %v1928_v43 }
 0x22b   :  { %v1122_v23 = vmax.f32 %v983_v6, %v1118_v17  ;;  %v1119_v24 = vmax.f32 %v1113_v19, 0.0 }
 0x22c   :  { %v1120_v25 = vmax.f32 %v981_v8, %v1116_v21  ;;  %v1117_v26 = vmax.f32 %v1105_v22, 0.0 }
 0x22d   :  { %v1123_v35 = vmax.f32 %v984_v10, %v1119_v24 }
 0x22e   :  { %v1121_v27 = vmax.f32 %v982_v11, %v1117_v26 }
 0x236   :  { %v1594_v34 = vpop.f32.mrb[28].mxu1 }
 0x237   :  { %v1249_v28 = vadd.f32 %v1594_v34, %v1930_v44  ;;  %v1240_v37 = vpop.f32.mrb[29].mxu1 }
 0x238   :  { %v1241_v36 = vadd.f32 %v1240_v37, %v1926_v46  ;;  %v1595_v29 = vpop.f32.mrb[30].mxu1 }
 0x239   :  { %v1257_v30 = vmax.f32 %v1249_v28, 0.0  ;;  %v1252_v31 = vadd.f32 %v1595_v29, %v1933_v47  ;;  %v1243_v53 = vpop.f32.mrb[31].mxu1 }
 0x23a   :  { %v1255_v32 = vmax.f32 %v1241_v36, 0.0  ;;  %v1244_v38 = vadd.f32 %v1243_v53, %v1928_v43 }
 0x23b   :  { %v1261_v41 = vmax.f32 %v1122_v23, %v1257_v30  ;;  %v1258_v39 = vmax.f32 %v1252_v31, 0.0 }
 0x23c   :  { %v1259_v58 = vmax.f32 %v1120_v25, %v1255_v32  ;;  %v1256_v40 = vmax.f32 %v1244_v38, 0.0 }
 0x23d   :  { %1265 = vst [vmem:[%s1983_s5 + $0x10] sm:$0xff] %v1261_v41  ;;  %v1262_v44 = vmax.f32 %v1123_v35, %v1258_v39 }
 0x23e   :  { %1263 = vst [vmem:[%s1983_s5] sm:$0xff] %v1259_v58  ;;  %v1260_v46 = vmax.f32 %v1121_v27, %v1256_v40 }
 0x23f   :  { %1266 = vst [vmem:[%s1983_s5 + $0x18] sm:$0xff] %v1262_v44 }
 0x240   :  { %1264 = vst [vmem:[%s1983_s5 + $0x8] sm:$0xff] %v1260_v46 }

</bundles_post_ra>
